<compile_context>
chip_gen: v7x
topology: tpu7x:2x2x1
jax: 0.10.0
libtpu: 0.0.40
codegen_flags: <defaults>
</compile_context>

<pallas_src>
import jax
import jax.numpy as jnp
from jax.experimental import pallas as pl
from jax.experimental.pallas import tpu as pltpu


def _attention_kernel(x_ref, w1_ref, v_ref, o_ref):
    # x_ref:  (C, TN)  channel-major pixel tile (lane axis = pixels)
    # w1_ref: (C, C)   fc1 weight (c_out, c_in), as stored by the conv
    # v_ref:  (C, 1)   v = W2.sum(axis=0)  (folded fc2 + channel-sum)
    # o_ref:  (1, TN)  per-pixel result, lane-dense
    h1 = jnp.dot(w1_ref[...], x_ref[...], preferred_element_type=jnp.float32)  # (C, TN) on MXU
    h1 = jnp.maximum(h1, 0.0)                                                  # ReLU (VPU)
    # v . relu(W1 x): VPU broadcast-mul + XLU sublane reduce -> (1, TN)
    o_ref[...] = jnp.sum(h1 * v_ref[...], axis=0, keepdims=True).astype(o_ref.dtype)


def _pick_pixel_tile(hw, cap=2048):
    """Largest lane-dense pixel tile: the full spatial extent if small enough,
    otherwise the biggest multiple-of-128 divisor of hw that fits the cap."""
    if hw <= cap:
        return hw
    start = cap - (cap % 128)
    for tn in range(start, 0, -128):
        if hw % tn == 0:
            return tn
    return hw  # fallback: single full-width tile (block == full dim is always legal)


def attention_forward(x_nchw, w1, w2, *, tile_n=2048):
    """x_nchw: (b, c, h, w); w1, w2: (c_out, c_in) from the 1x1 conv weights."""
    b, c, h, w = x_nchw.shape
    hw = h * w

    # NCHW kept as-is; (b, c, h, w) -> (b, c, h*w) is a free view (no HBM round-trip).
    x3 = x_nchw.reshape(b, c, hw)
    # Algebraic fold: sum over output channels of fc2 == dot with column-sum of W2.
    v = jnp.sum(w2, axis=0).reshape(c, 1).astype(x_nchw.dtype)

    tn = _pick_pixel_tile(hw, tile_n)
    grid = (b, hw // tn)

    out = pl.pallas_call(
        _attention_kernel,
        out_shape=jax.ShapeDtypeStruct((b, 1, hw), x_nchw.dtype),
        grid_spec=pltpu.PrefetchScalarGridSpec(
            num_scalar_prefetch=0,
            grid=grid,
            in_specs=[
                # x tile: batch dim squeezed, kernel sees (C, TN)
                pl.BlockSpec((None, c, tn), lambda i, j: (i, 0, j)),
                # W1 resident across the whole grid
                pl.BlockSpec((c, c), lambda i, j: (0, 0)),
                # folded fc2 vector, resident
                pl.BlockSpec((c, 1), lambda i, j: (0, 0)),
            ],
            # lane-dense output block (1, TN); batch squeezed
            out_specs=pl.BlockSpec((None, 1, tn), lambda i, j: (i, 0, j)),
        ),
        compiler_params=pltpu.CompilerParams(
            dimension_semantics=("parallel", "parallel"),
            # Tiny footprint at C=32 (x tile <= 256 KiB x2 buffers + 4 KiB weights);
            # explicit limit keeps us safely inside v7x's smaller (64 MiB) VMEM.
            vmem_limit_bytes=32 * 1024 * 1024,
        ),
    )(x3, w1, v)

    return out.reshape(b, 1, h, w)


def _reference(x_nchw, w1, w2):
    # Pure-JAX reference of the PyTorch forward (NCHW).
    b, c, h, w = x_nchw.shape
    x = jnp.einsum("oc,bchw->bohw", w1, x_nchw)
    x = jnp.maximum(x, 0.0)
    x = jnp.einsum("oc,bchw->bohw", w2, x)
    x = jnp.sum(x, axis=1)
    return x.reshape(b, 1, h, w)


if __name__ == "__main__":
    key = jax.random.PRNGKey(0)
    k_x, k_w1, k_w2 = jax.random.split(key, 3)

    batch, channel, height, width = 2, 32, 16, 16

    x = jax.random.normal(k_x, (batch, channel, height, width), dtype=jnp.float32)
    # Conv2d(channel, channel, 1, bias=False) weights: (c_out, c_in, 1, 1) -> (c_out, c_in)
    w1 = jax.random.normal(k_w1, (channel, channel), dtype=jnp.float32) * 0.1
    w2 = jax.random.normal(k_w2, (channel, channel), dtype=jnp.float32) * 0.1
    # TODO(synk): `self.att` (3x3 conv) and `self.sigmoid` are unused in forward; not implemented.

    out = attention_forward(x, w1, w2)
    out = jax.block_until_ready(out)

    ref = _reference(x, w1, w2)
    assert out.shape == (batch, 1, height, width)
    assert jnp.allclose(out, ref, atol=1e-4, rtol=1e-4)

    print("KERNEL_OK")
</pallas_src>

<mosaic_0001>
module attributes {stable_mosaic.version = 11 : i64} {
  func.func @_attention_kernel(%arg0: i32, %arg1: i32, %arg2: memref<1x32x256xf32, #tpu.memory_space<vmem>>, %arg3: memref<32x32xf32, #tpu.memory_space<vmem>>, %arg4: memref<32x1xf32, #tpu.memory_space<vmem>>, %arg5: memref<1x1x256xf32, #tpu.memory_space<vmem>>) attributes {dimension_semantics = [#tpu.dimension_semantics<parallel>, #tpu.dimension_semantics<parallel>], iteration_bounds = array<i64: 2, 1>, scalar_prefetch = 0 : i64, scratch_operands = 0 : i64, tpu.core_type = #tpu.core_type<tc>, window_params = [{transform_indices = @transform_0, window_bounds = array<i64: 1, 32, 256>}, {pipeline_mode = #tpu.pipeline_mode<synchronous>, transform_indices = @transform_1, window_bounds = array<i64: 32, 32>}, {pipeline_mode = #tpu.pipeline_mode<synchronous>, transform_indices = @transform_2, window_bounds = array<i64: 32, 1>}, {transform_indices = @transform_3, window_bounds = array<i64: 1, 1, 256>}]} {
    %c0 = arith.constant 0 : index
    %c0_0 = arith.constant 0 : index
    %0 = vector.load %arg3[%c0, %c0_0] : memref<32x32xf32, #tpu.memory_space<vmem>>, vector<32x32xf32>
    %c0_1 = arith.constant 0 : index
    %c0_2 = arith.constant 0 : index
    %c0_3 = arith.constant 0 : index
    %1 = vector.load %arg2[%c0_1, %c0_2, %c0_3] : memref<1x32x256xf32, #tpu.memory_space<vmem>>, vector<1x32x256xf32>
    %2 = vector.shape_cast %1 : vector<1x32x256xf32> to vector<32x256xf32>
    %cst = arith.constant dense<0.000000e+00> : vector<32x256xf32>
    %3 = tpu.matmul %0, %2, %cst {dimension_numbers = #tpu.dot_dimension_numbers<[1], [0], [0], [1], [0, 0, 1, 1], [], []>} : vector<32x32xf32>, vector<32x256xf32>, vector<32x256xf32> -> vector<32x256xf32>
    %cst_4 = arith.constant 0.000000e+00 : f32
    %4 = vector.broadcast %cst_4 : f32 to vector<32x256xf32>
    %5 = arith.maximumf %3, %4 : vector<32x256xf32>
    %c0_5 = arith.constant 0 : index
    %c0_6 = arith.constant 0 : index
    %6 = vector.load %arg4[%c0_5, %c0_6] : memref<32x1xf32, #tpu.memory_space<vmem>>, vector<32x1xf32>
    %7 = vector.broadcast %6 : vector<32x1xf32> to vector<32x256xf32>
    %8 = arith.mulf %5, %7 : vector<32x256xf32>
    %cst_7 = arith.constant dense<0.000000e+00> : vector<256xf32>
    %9 = vector.multi_reduction <add>, %8, %cst_7 [0] : vector<32x256xf32> to vector<256xf32>
    %10 = vector.shape_cast %9 : vector<256xf32> to vector<1x256xf32>
    %c0_8 = arith.constant 0 : index
    %c0_9 = arith.constant 0 : index
    %c0_10 = arith.constant 0 : index
    %11 = vector.load %arg5[%c0_8, %c0_9, %c0_10] : memref<1x1x256xf32, #tpu.memory_space<vmem>>, vector<1x1x256xf32>
    %12 = vector.shape_cast %11 : vector<1x1x256xf32> to vector<1x256xf32>
    %13 = vector.shape_cast %10 : vector<1x256xf32> to vector<1x1x256xf32>
    tpu.vector_store %arg5[%c0_8, %c0_9, %c0_10], %13 {strides = array<i32>} : memref<1x1x256xf32, #tpu.memory_space<vmem>>, vector<1x1x256xf32>,
    return
  }
  func.func @transform_0(%arg0: i32, %arg1: i32) -> (i32, i32, i32) {
    %c0_i32 = arith.constant 0 : i32
    %c0_i32_0 = arith.constant 0 : i32
    return %arg0, %c0_i32, %arg1 : i32, i32, i32
  }
  func.func @transform_1(%arg0: i32, %arg1: i32) -> (i32, i32) {
    %c0_i32 = arith.constant 0 : i32
    %c0_i32_0 = arith.constant 0 : i32
    %c0_i32_1 = arith.constant 0 : i32
    return %c0_i32, %c0_i32_0 : i32, i32
  }
  func.func @transform_2(%arg0: i32, %arg1: i32) -> (i32, i32) {
    %c0_i32 = arith.constant 0 : i32
    %c0_i32_0 = arith.constant 0 : i32
    %c0_i32_1 = arith.constant 0 : i32
    return %c0_i32, %c0_i32_0 : i32, i32
  }
  func.func @transform_3(%arg0: i32, %arg1: i32) -> (i32, i32, i32) {
    %c0_i32 = arith.constant 0 : i32
    %c0_i32_0 = arith.constant 0 : i32
    return %arg0, %c0_i32, %arg1 : i32, i32, i32
  }
}

</mosaic_0001>

<bundles_post_ra>
// kernel: tpu_custom_call.1
= control target key start
LH: loop header
LB: loop body
LE: loop exit
PB: predicated region body
PF: predicated region fallthrough
CT: control target
= control target key end

     0   :  { %8 = vsyncpa [#allocation3], 0  ;;  %s946_s0 = inlined_call_operand.hbm [shape: f32[2,32,256], index: 0, kind: input, shape index: {}]   ;;  %s947_s1 = inlined_call_operand.vmem [shape: f32[32,32], index: 1, kind: input, shape index: {}]   ;;  %s948_s2 = inlined_call_operand.vmem [shape: f32[32,1], index: 2, kind: input, shape index: {}]   ;;  %s949_s3 = inlined_call_operand.hbm [shape: f32[2,1,256], index: 3, kind: output, shape index: {}]  }
   0x1   :  { %10 = vsyncpa [#allocation3 + $0x1], 0 }
   0x2   :  { %11 = vsyncpa [#allocation4], 0 }
   0x3   :  { %13 = vsyncpa [#allocation4 + $0x1], 0  ;;  %s748_s12 = smov 0   ;;  %s750_s13 = smov 0  }
   0x4   :  { %s752_s14 = smov 0   ;;  %s754_s15 = smov 0  }
   0x5   :  { %s756_s16 = smov 0   ;;  %s758_s17 = smov 0  }
   0x6 LB: > { %s505_s18 = sadd.s32 4294967295, %s719_s17   ;;  %s506_s19 = sadd.s32 4294967294, %s719_s17   ;;  %s719_s17 = sphi %s758_s17, %s19_s17   ;;  %s715_s16 = sphi %s756_s16, %s964_s16   ;;  %s711_s15 = sphi %s754_s15, %s963_s15   ;;  %s707_s14 = sphi %s752_s14, %s962_s14   ;;  %s703_s13 = sphi %s750_s13, %s961_s13   ;;  %s699_s12 = sphi %s748_s12, %s960_s12  }
   0x7   : > { %s31_s20 = sadd.s32 1, %s715_s16  ;;  %s40_s21 = sadd.s32 1, %s707_s14 }
   0x8   : > { %p33_p0 = scmp.ge.s32.totalorder %s31_s20, 2  ;;  %p47_p1 = scmp.ne.s32.totalorder %s707_s14, %s703_s13 }
   0x9   : > { %p48_p2 = scmp.eq.s32.totalorder %s719_s17, 0  ;;  %p53_p3 = scmp.ne.s32.totalorder %s703_s13, %s699_s12 }
   0xa   : > { %s966_s20 = smov (%p33_p0, %s31_s20), 0  ;;  %p54_p5 = scmp.eq.s32.totalorder %s505_s18, 0 }
   0xb   : > { %p789_p4 = por %p48_p2, %p47_p1  ;;  %s35_s23 = ssub.s32 %s715_s16, %s966_s20 }
   0xc   : > { %p121_p6 = scmp.eq.s32.totalorder %s505_s18, 1  ;;  %p38_p7 = scmp.eq.s32.totalorder %s35_s23, 0 }
   0xd   : > { %p795_p8 = por %p54_p5, %p53_p3  ;;  %p127_p10 = scmp.eq.s32.totalorder %s506_s19, 1 }
   0xe   : > { %p799_p9 = por %p121_p6, %p47_p1  ;;  %p550_p13 = scmp.lt.s32.totalorder %s719_s17, 2 }
   0xf   : > { %s804_s26 = scalar_select %p38_p7, %s707_s14, %s40_s21  }
  0x10   : > { %s953_s25 = scalar_select %p799_p9, 1, 0 }
  0x11   : > { %p806_p11 = por %p127_p10, %p53_p3  ;;  %s153_s28 = sand.u32 1, %s707_s14  }
  0x12   : > { %s509_s29 = sshll.u32 %s153_s28, 6  ;;  %s524_s30 = sshll.u32 %s715_s16, 10 }
  0x13   : > { %s954_s27 = scalar_select %p806_p11, 1, 0 }
  0x14   : > { %s817_s6 = scalar_lea.hbm %s946_s0, %s524_s30  ;;  %s157_s7 = scalar_lea.vmem [#allocation2], %s509_s29 }
  0x15   : > { %s166_s8 = sshll.u32 %s157_s7, 4  ;;  %p823_p0 = pnand %p550_p13, %p789_p4  ;;  %s819_s8 = int_to_ptr.vmem [resolvable:$true] %s166_s8 }
  0x16   : > { %s828_s10 = scalar_lea.sflag [#allocation3], %s153_s28  ;;  %s607_s11 = scalar_lea.hbm %s817_s6, 1024 }
  0x17   : > { %p608_p2 = scmp.ne.s32.totalorder %s817_s6, %s607_s11  ;;  %p609_p3 = pneg %p823_p0 }
  0x18   : > { %s612_s21 = scalar_lea.hbm %s946_s0, 2048  ;;  %p613_p4 = scmp.lt.u32.totalorder %s817_s6, %s946_s0 }
  0x19   : > { %p610_p5 = pnand %p609_p3, %p608_p2  ;;  %p614_p7 = scmp.lt.u32.totalorder %s612_s21, %s607_s11 }
  0x1a   : > { %p616_p13 = scmp.lt.u32.totalorder %s607_s11, %s817_s6 }
  0x1b   : > { %p611_p6 = pneg %p610_p5  ;;  %p615_p10 = por %p614_p7, %p613_p4 }
  0x1d   : > { %p617_p12 = por %p616_p13, %p615_p10 }
  0x1f   : > { %p618_p1 = pnand %p617_p12, %p611_p6 }
  0x21   : > { %621 = shalt.err (!%p618_p1)
}
  0x22   : > { %s622_s28 = scalar_lea.vmem %s819_s8, 1024  ;;  %s721_s29 = smov [#allocation2]  }
  0x23   : > { %p623_p2 = scmp.ne.s32.totalorder %s819_s8, %s622_s28  ;;  %s627_s30 = sshll.u32 %s721_s29, 4  ;;  %s628_s30 = int_to_ptr.vmem [resolvable:$false] %s627_s30 }
  0x24   : > { %s629_s4 = scalar_lea.vmem %s628_s30, 2048  ;;  %p630_p9 = scmp.lt.s32.totalorder %s819_s8, %s628_s30 }
  0x25   : > { %p625_p5 = pnand %p623_p2, %p609_p3  ;;  %p631_p4 = scmp.lt.s32.totalorder %s629_s4, %s622_s28 }
  0x27   : > { %p626_p11 = pneg %p625_p5  ;;  %p632_p7 = por %p631_p4, %p630_p9 }
  0x29   : > { %p633_p10 = pnand %p632_p7, %p626_p11 }
  0x2b   : > { %636 = shalt.err (!%p633_p10)
}
  0x2c   : > { %s722_s5 = smov 256   ;;  %s723_s7 = smov 16  }
  0x2d   : > { %545 = dma.hbm_to_vmem [thread:$0]  (!%p823_p0), %s817_s6, 1024, %s819_s8, %s828_s10, %s722_s5, %s722_s5, %s723_s7  }
  0x2e   : > { %p174_p12 = scmp.lt.s32.totalorder %s719_s17, 3  ;;  %p956_p1 = scmp.ge.s32.totalorder %s719_s17, 1 }
  0x30   : > { %p175_p3 = pnand %p956_p1, %p174_p12 }
  0x31   : > { %s860_s11 = sand.u32 (!%p175_p3), 1, %s703_s13  }
  0x32   : > { %178 = sbr.rel (%p175_p3) target bundleno = 328 (0x148), region = 32  ;;  %s513_s18 = sshll.u32 (!%p175_p3), %s860_s11, 6 }
  0x33   : > { %s181_s19 = scalar_lea.sflag (!%p175_p3), [#allocation3], %s860_s11  ;;  %s184_s21 = scalar_lea.vmem (!%p175_p3), [#allocation2], %s513_s18 }
  0x39   : > { %690 = dma.done.wait (%p795_p8), %s181_s19, 1024  }
  0x3a   : > { %692 = vsyncadd (%p795_p8), %s181_s19, 4294966272  ;;  %v724_v0 = vmov 0.0   ;;  %v725_v1 = vmov 0   ;;  %v214_v2 = vld [vmem:[%s184_s21 + $0x8] sm:$0xff]  ;;  %v216_v3 = vld [vmem:[%s184_s21 + $0x18] sm:$0xff]  ;;  %vm221_vm0 = vcmask 261120   ;;  %v387_v62 = vlaneseq }
  0x3b   : > { %298 = vmatprep.mubr.f32.mxu0 %v724_v0  ;;  %310 = vmatprep.mubr.f32.mxu1 %v724_v0  ;;  %v213_v4 = vld [vmem:[%s184_s21] sm:$0xff]  ;;  %v526_v5 = vpack.c.bf16 %v216_v3, %v214_v2  ;;  %v215_v6 = vld [vmem:[%s184_s21 + $0x10] sm:$0xff]  ;;  %v218_v7 = vld [vmem:[%s184_s21 + $0x28] sm:$0xff]  ;;  %v726_v60 = vmov 1966171168   ;;  %s514_s24 = sshll.u32 %s860_s11, 1 }
  0x3c   : > { %605 = vset.pattern.permute.xlu0 %v725_v1  ;;  %606 = vset.pattern.permute.xlu1 %v725_v1  ;;  %v220_v8 = vld [vmem:[%s184_s21 + $0x38] sm:$0xff]  ;;  %v528_v9 = vpack.c.bf16 %v215_v6, %v213_v4  ;;  %v217_v11 = vld [vmem:[%s184_s21 + $0x20] sm:$0xff]  ;;  %v219_v12 = vld [vmem:[%s184_s21 + $0x30] sm:$0xff]  ;;  %v385_v61 = vunpack.c.l.s4 %v726_v60  ;;  %v388_v4 = vshrl.u32 %v387_v62, 7  ;;  %s525_s6 = sshll.u32 %s711_s15, 5  ;;  %s206_s8 = scalar_lea.vmem [#allocation5], %s514_s24 }
  0x3d   : > { %v530_v10 = vpack.c.bf16 %v220_v8, %v218_v7  ;;  %527 = vmatprep.subr.bf16.mxu0 %v526_v5  ;;  %534 = vmatprep.subr.bf16.mxu1 %v526_v5  ;;  %v532_v13 = vpack.c.bf16 %v219_v12, %v217_v11  ;;  %v331_v14 = vld [vmem:[%s948_s2] sm:$0xff]  ;;  %v333_v15 = vld [vmem:[%s948_s2 + $0x10] sm:$0xff]  ;;  %v332_v16 = vld [vmem:[%s948_s2 + $0x8] sm:$0xff]  ;;  %s421_s9 = sshll.u32 %s206_s8, 4  ;;  %vm401_vm1 = vcmp.lt.s32.totalorder %v387_v62, 256  ;;  %s897_s23 = scalar_lea.hbm %s949_s3, %s525_s6  ;;  %s899_s9 = int_to_ptr.vmem [resolvable:$true] %s421_s9 }
  0x3e   : > { %529 = vmatpush1.bf16.msra.mxu0 %v528_v9  ;;  %536 = vmatpush1.bf16.msra.mxu1 %v528_v9  ;;  %v334_v17 = vld [vmem:[%s948_s2 + $0x18] sm:$0xff]  ;;  %v209_v18 = vld [vmem:[%s947_s1] sm:$0xff]  ;;  %v211_v19 = vld [vmem:[%s947_s1 + $0x10] sm:$0xff]  ;;  %v386_v3 = vunpack.c.0.s8 %v385_v61  ;;  %s405_s28 = scalar_lea.sflag [#allocation4], %s860_s11  ;;  %s637_s29 = scalar_lea.vmem %s899_s9, 32 }
  0x3f   : > { %531 = vmatprep.subr.bf16.mxu0 %v530_v10  ;;  %535 = vmatprep.subr.bf16.mxu1 %v530_v10  ;;  %v210_v20 = vld [vmem:[%s947_s1 + $0x8] sm:$0xff]  ;;  %v212_v21 = vld [vmem:[%s947_s1 + $0x18] sm:$0xff]  ;;  %p638_p8 = scmp.ne.s32.totalorder %s899_s9, %s637_s29  ;;  %p957_p9 = scmp.ne.s32.totalorder %s953_s25, 0 }
  0x40   : > { %337 = vperm.xlu0 %605, %v331_v14   ;;  %347 = vperm.xlu1 %606, %v333_v15   ;;  %v389_v9 = vsub.s32 %v386_v3, %v388_v4  ;;  %s727_s15 = smov [#allocation5]  }
  0x41   : > { %p639_p11 = pnand %p638_p8, %p957_p9  ;;  %s641_s30 = sshll.u32 %s727_s15, 4  ;;  %s642_s30 = int_to_ptr.vmem [resolvable:$false] %s641_s30 }
  0x42   : > { %533 = vmatpush1.bf16.msra.mxu0 %v532_v13  ;;  %537 = vmatpush1.bf16.msra.mxu1 %v532_v13  ;;  %s643_s4 = scalar_lea.vmem %s642_s30, 64  ;;  %p644_p6 = scmp.lt.s32.totalorder %s899_s9, %s642_s30 }
  0x43   : > { %p640_p0 = pneg %p639_p11  ;;  %p645_p13 = scmp.lt.s32.totalorder %s643_s4, %s637_s29 }
  0x44   : > { %342 = vperm.xlu0 %605, %v332_v16   ;;  %352 = vperm.xlu1 %606, %v334_v17  }
  0x45   : > { %515 = vmatmul.mubr.msk.f32.vlgmr.msra.gmra.mrb[0].mxu0 %vm221_vm0, %v209_v18  ;;  %517 = vmatmul.mubr.msk.f32.vlgmr.msra.gmra.mrb[0].mxu1 %vm221_vm0, %v211_v19  ;;  %p646_p2 = por %p645_p13, %p644_p6 }
  0x46   : > { %304 = vmatprep.mubr.f32.mxu0 %v724_v0  ;;  %316 = vmatprep.mubr.f32.mxu1 %v724_v0 }
  0x47   : > { %p647_p5 = pnand %p646_p2, %p640_p0 }
  0x49   : > { %516 = vmatmul.mubr.msk.f32.gmra.mrb[2].mxu0 %vm221_vm0, %v210_v20  ;;  %518 = vmatmul.mubr.msk.f32.gmra.mrb[2].mxu1 %vm221_vm0, %v212_v21 }
  0xbf   : > { %v338_v22 = vpop.permute.xlu0 %337  ;;  %v348_v27 = vpop.permute.xlu1 %347 }
  0xc3   : > { %v343_v36 = vpop.permute.xlu0 %342  ;;  %v353_v45 = vpop.permute.xlu1 %352 }
 0x118   : > { %v300_v23 = vpop.f32.mrb[0].mxu0  ;;  %v312_v24 = vpop.f32.mrb[0].mxu1 }
 0x119   : > { %v302_v25 = vpop.f32.mrb[1].mxu0  ;;  %v314_v26 = vpop.f32.mrb[1].mxu1  ;;  %v323_v28 = vmax.f32 %v300_v23, 0.0  ;;  %v327_v32 = vmax.f32 %v312_v24, 0.0 }
 0x11a   : > { %v324_v29 = vmax.f32 %v302_v25, 0.0  ;;  %v328_v37 = vmax.f32 %v314_v26, 0.0 }
 0x11b   : > { %v355_v39 = vmul.f32 %v338_v22, %v323_v28  ;;  %v359_v46 = vmul.f32 %v348_v27, %v327_v32 }
 0x11c   : > { %v306_v30 = vpop.f32.mrb[2].mxu0  ;;  %v318_v31 = vpop.f32.mrb[2].mxu1  ;;  %v356_v42 = vmul.f32 %v338_v22, %v324_v29  ;;  %v360_v48 = vmul.f32 %v348_v27, %v328_v37 }
 0x11d   : > { %v325_v33 = vmax.f32 %v306_v30, 0.0  ;;  %v308_v34 = vpop.f32.mrb[3].mxu0  ;;  %v320_v35 = vpop.f32.mrb[3].mxu1  ;;  %v329_v41 = vmax.f32 %v318_v31, 0.0 }
 0x11e   : > { %v326_v38 = vmax.f32 %v308_v34, 0.0  ;;  %v330_v44 = vmax.f32 %v320_v35, 0.0 }
 0x11f   : > { %v357_v40 = vmul.f32 %v343_v36, %v325_v33  ;;  %v361_v50 = vmul.f32 %v353_v45, %v329_v41 }
 0x120   : > { %v358_v43 = vmul.f32 %v343_v36, %v326_v38  ;;  %v362_v52 = vmul.f32 %v353_v45, %v330_v44 }
 0x121   : > { %v363_v47 = vadd.f32 %v357_v40, %v355_v39 }
 0x122   : > { %v372_v49 = vadd.f32 %v358_v43, %v356_v42 }
 0x123   : > { %v364_v51 = vadd.f32 %v363_v47, %v359_v46 }
 0x124   : > { %v373_v53 = vadd.f32 %v372_v49, %v360_v48 }
 0x125   : > { %v365_v54 = vadd.f32 %v364_v51, %v361_v50 }
 0x126   : > { %v374_v55 = vadd.f32 %v373_v53, %v362_v52 }
 0x127   : > { %v366_v56 = vrot.slane %v365_v54, 4 }
 0x128   : > { %v375_v57 = vrot.slane %v374_v55, 4 }
 0x129   : > { %v367_v58 = vadd.f32 %v366_v56, %v365_v54 }
 0x12a   : > { %v376_v59 = vadd.f32 %v375_v57, %v374_v55 }
 0x12b   : > { %v368_v63 = vrot.slane %v367_v58, 2 }
 0x12c   : > { %v377_v0 = vrot.slane %v376_v59, 2 }
 0x12d   : > { %v369_v1 = vadd.f32 %v368_v63, %v367_v58 }
 0x12e   : > { %v378_v2 = vadd.f32 %v377_v0, %v376_v59 }
 0x12f   : > { %v370_v5 = vrot.slane %v369_v1, 1 }
 0x130   : > { %v379_v6 = vrot.slane %v378_v2, 1 }
 0x131   : > { %v371_v7 = vadd.f32 %v370_v5, %v369_v1 }
 0x132   : > { %v380_v8 = vadd.f32 %v379_v6, %v378_v2 }
 0x134   : > { %v383_v10 = vcombine.low %v371_v7, %v380_v8 }
 0x136   : > { %v390_v11 = vrot.slane %v383_v10, %v389_v9 }
 0x138   : > { %v397_v12 = vrot.slane %v390_v11, %v389_v9 }
 0x13a   : > { %403 = vst.msk [vmem:[%s206_s8] sm:$0x3] %vm401_vm1, %v397_v12 }
 0x13b   : > { %650 = shalt.err (!%p647_p5)
}
 0x13c   : > { %s651_s11 = scalar_lea.hbm %s897_s23, 32  ;;  %s655_s18 = scalar_lea.hbm %s949_s3, 64 }
 0x13d   : > { %p652_p4 = scmp.ne.s32.totalorder %s897_s23, %s651_s11  ;;  %p656_p12 = scmp.lt.u32.totalorder %s897_s23, %s949_s3 }
 0x13e   : > { %p657_p1 = scmp.lt.u32.totalorder %s655_s18, %s651_s11  ;;  %p659_p8 = scmp.lt.u32.totalorder %s651_s11, %s897_s23 }
 0x13f   : > { %p653_p7 = pnand %p652_p4, %p957_p9 }
 0x140   : > { %p658_p3 = por %p657_p1, %p656_p12 }
 0x141   : > { %p654_p10 = pneg %p653_p7 }
 0x142   : > { %p660_p11 = por %p659_p8, %p658_p3 }
 0x144   : > { %p661_p0 = pnand %p660_p11, %p654_p10 }
 0x146   : > { %664 = shalt.err (!%p661_p0)
}
 0x147   : > { %540 = dma.vmem_to_hbm [thread:$0]  (%p957_p9), %s899_s9, 32, %s897_s23, %s405_s28  }
 0x148 PF: > { %s433_s24 = sand.u32 1, %s699_s12   ;;  %p958_p6 = scmp.ne.s32.totalorder %s954_s27, 0 }
 0x149   : > { %p959_p13 = scmp.ge.s32.totalorder %s719_s17, 2  ;;  %s434_s6 = scalar_lea.sflag [#allocation4], %s433_s24 }
 0x14b   : > { %p547_p2 = pnand %p959_p13, %p958_p6 }
 0x14d   : > { %694 = dma.done.wait (!%p547_p2), %s434_s6, 32  }
 0x14e   : > { %696 = vsyncadd (!%p547_p2), %s434_s6, 4294967264  ;;  %s19_s17 = sadd.s32 1, %s719_s17   ;;  %s960_s12 = smov %s703_s13 }
 0x14f   : > { %p16_p5 = scmp.ge.s32.totalorder %s19_s17, 4   ;;  %s961_s13 = smov %s707_s14 }
 0x150   : > { %s962_s14 = smov %s804_s26  ;;  %s963_s15 = smov %s715_s16 }
 0x151   : > { %s964_s16 = smov %s966_s20  ;;  %18 = sbr.rel (!%p16_p5) target bundleno = 6 (0x6), region = 77 }
 0x158   :  { %439 = vsyncpa [#allocation3], 1 }
 0x159   :  { %441 = vsyncpa [#allocation3 + $0x1], 1 }
 0x15a   :  { %442 = vsyncpa [#allocation4], 1 }
 0x15b   :  { %444 = vsyncpa [#allocation4 + $0x1], 1 }

</bundles_post_ra>
